<compile_context>
chip_gen: v7x
topology: tpu7x:2x2x1
jax: 0.10.0
libtpu: 0.0.40
codegen_flags: <defaults>
</compile_context>

<pallas_src>
import functools
import math

import jax
import jax.numpy as jnp
from jax.experimental import pallas as pl
from jax.experimental.pallas import tpu as pltpu

NEG_SLOPE = 0.01        # PyTorch F.leaky_relu default negative slope
LANE = 128              # TPU lane width
SUBLANE_BF16 = 16       # bf16 rows per packed sublane group
_MIN_SPLIT_ROWS = 256   # min rows per core before a 2-way (v7x) split pays off


def _leaky_relu(x):
    return jnp.where(x > 0, x, NEG_SLOPE * x)


def _round_up(n, m):
    return ((n + m - 1) // m) * m


def _pad_to(a, shape):
    pads = [(0, t - s) for s, t in zip(a.shape, shape)]
    if all(p == (0, 0) for p in pads):
        return a
    return jnp.pad(a, pads)


# ---------------------------------------------------------------------------
# Kernel: fused 4-layer MLP head on one (tb, D) batch tile.
# ---------------------------------------------------------------------------
def teacher_head_kernel(x_ref, w_ref, b_ref, out_ref, *, nclass):
    """x_ref: (tb, D) f32; w_ref: (4, D, D) bf16; b_ref: (4, 1, D) f32;
    out_ref: (tb, nclass) f32."""
    cdt = w_ref.dtype                       # bf16 MXU fast path
    h = x_ref[...].astype(cdt)              # cast in-kernel (no wrapper pass)
    for k in range(3):
        h = jnp.dot(h, w_ref[k], preferred_element_type=jnp.float32) + b_ref[k]
        h = _leaky_relu(h).astype(cdt)      # k == 2 is "middle" in the module
    out = jnp.dot(h, w_ref[3], preferred_element_type=jnp.float32) + b_ref[3]
    # Store only the real class columns (narrow, masked store; kernel is DMA-bound).
    out_ref[...] = out[:, :nclass].astype(out_ref.dtype)


# ---------------------------------------------------------------------------
# Batch-tile selection: big tiles, 16-row alignment, >=2 tiles when there is
# enough work (v7x has two TensorCores), near-even tiles to minimize padding.
# ---------------------------------------------------------------------------
def _choose_batch_tile(B, block_b):
    b_req = _round_up(max(B, 1), SUBLANE_BF16)
    n_tiles = pl.cdiv(b_req, block_b)
    if n_tiles == 1 and b_req >= 2 * _MIN_SPLIT_ROWS:
        n_tiles = 2                         # shard across both v7x TCs
    tb = _round_up(pl.cdiv(b_req, n_tiles), SUBLANE_BF16)
    n_tiles = pl.cdiv(b_req, tb)
    return tb, n_tiles


# ---------------------------------------------------------------------------
# Wrapper
# ---------------------------------------------------------------------------
def teacher_head_forward(g_enc, params, *, nclass, block_b=2048):
    """g_enc: [B, dim*num_gc_layers] float32. params: stacked/padded params."""
    B, d_in = g_enc.shape
    w, b = params["w"], params["b"]
    D = w.shape[-1]

    tb, n_tiles = _choose_batch_tile(B, block_b)
    b_pad = tb * n_tiles

    x = _pad_to(g_enc, (b_pad, D))          # f32; only remainder rows / feature pad

    flops = 2 * b_pad * 4 * D * D
    bytes_accessed = (b_pad * D * 4                       # x (f32, read once)
                      + int(w.size) * w.dtype.itemsize    # weights (bf16)
                      + int(b.size) * 4                   # biases  (f32)
                      + b_pad * nclass * 4)               # narrow f32 output

    out = pl.pallas_call(
        functools.partial(teacher_head_kernel, nclass=nclass),
        out_shape=jax.ShapeDtypeStruct((b_pad, nclass), jnp.float32),
        grid=(n_tiles,),
        in_specs=[
            pl.BlockSpec((tb, D), lambda i: (i, 0)),       # batch-tiled activations
            pl.BlockSpec(w.shape, lambda i: (0, 0, 0)),    # VMEM-resident weights
            pl.BlockSpec(b.shape, lambda i: (0, 0, 0)),    # VMEM-resident biases
        ],
        out_specs=pl.BlockSpec((tb, nclass), lambda i: (i, 0)),
        compiler_params=pltpu.CompilerParams(
            dimension_semantics=("parallel",)),
        cost_estimate=pl.CostEstimate(flops=flops, transcendentals=0,
                                      bytes_accessed=bytes_accessed),
    )(x, w, b)

    return out if b_pad == B else out[:B]


# ---------------------------------------------------------------------------
# Params: deterministic synthetic init matching nn.Linear shapes (W stored as
# [in, out]), then zero-padded to a uniform (D, D) with D a multiple of 128
# lanes, stacked, and cast (weights -> bf16, biases -> f32).
# ---------------------------------------------------------------------------
def init_params(key, dim, num_gc_layers, nclass, compute_dtype=jnp.bfloat16):
    d_in = dim * num_gc_layers
    dims = [(d_in, dim * 3), (dim * 3, dim * 2), (dim * 2, dim), (dim, nclass)]
    D = _round_up(max(d_in, dim * 3, dim * 2, dim, nclass), LANE)

    raw = {}
    keys = jax.random.split(key, 2 * len(dims))
    for i, (fi, fo) in enumerate(dims):
        bound = 1.0 / math.sqrt(fi)         # PyTorch Linear default init scale
        raw[f"w{i+1}"] = jax.random.uniform(
            keys[2 * i], (fi, fo), jnp.float32, -bound, bound)
        raw[f"b{i+1}"] = jax.random.uniform(
            keys[2 * i + 1], (fo,), jnp.float32, -bound, bound)

    w_stack = jnp.stack(
        [_pad_to(raw[f"w{i+1}"], (D, D)) for i in range(4)]).astype(compute_dtype)
    b_stack = jnp.stack(
        [_pad_to(raw[f"b{i+1}"][None, :], (1, D)) for i in range(4)]
    ).astype(jnp.float32)
    return raw, {"w": w_stack, "b": b_stack}


# ---------------------------------------------------------------------------
# References
# ---------------------------------------------------------------------------
def reference_forward_f32(g_enc, raw):
    """Plain-JAX float32 reference of the PyTorch module semantics."""
    h = _leaky_relu(g_enc @ raw["w1"] + raw["b1"])
    h = _leaky_relu(h @ raw["w2"] + raw["b2"])
    h = _leaky_relu(h @ raw["w3"] + raw["b3"])
    return h @ raw["w4"] + raw["b4"]


def reference_forward_matched(g_enc, padded, nclass):
    """Plain-JAX reference with identical padded / bf16 / f32-accum numerics."""
    w, b = padded["w"], padded["b"]
    D = w.shape[-1]
    cdt = w.dtype
    h = _pad_to(g_enc, (g_enc.shape[0], D)).astype(cdt)
    for k in range(3):
        h = jnp.dot(h, w[k], preferred_element_type=jnp.float32) + b[k]
        h = _leaky_relu(h).astype(cdt)
    out = jnp.dot(h, w[3], preferred_element_type=jnp.float32) + b[3]
    return out[:, :nclass]


if __name__ == "__main__":
    # Small shapes: dim=32, num_gc_layers=4 -> input features 128; nclass=8.
    dim, num_gc_layers, nclass = 32, 4, 8
    batch = 8

    key = jax.random.PRNGKey(0)
    k_x, k_p = jax.random.split(key)

    g_enc = jax.random.normal(k_x, (batch, dim * num_gc_layers), jnp.float32)
    raw, padded = init_params(k_p, dim, num_gc_layers, nclass)

    out = teacher_head_forward(g_enc, padded, nclass=nclass)
    out = jax.block_until_ready(out)
    assert out.shape == (batch, nclass), out.shape

    # Tight check vs a reference with matched (padded, bf16, f32-accum) numerics.
    ref_matched = reference_forward_matched(g_enc, padded, nclass)
    assert jnp.allclose(out, ref_matched, atol=1e-2, rtol=1e-2), (
        "mismatch vs matched-precision reference")

    # Sanity check vs the full-f32 PyTorch-semantics reference (bf16 rounding only).
    ref_f32 = reference_forward_f32(g_enc, raw)
    assert jnp.allclose(out, ref_f32, atol=5e-2, rtol=5e-2), (
        "mismatch vs float32 reference beyond bf16 tolerance")

    print("KERNEL_OK")
</pallas_src>

<mosaic_0001>
module attributes {stable_mosaic.version = 11 : i64} {
  func.func @teacher_head_kernel(%arg0: i32, %arg1: memref<16x128xf32, #tpu.memory_space<vmem>>, %arg2: memref<4x128x128xbf16, #tpu.memory_space<vmem>>, %arg3: memref<4x1x128xf32, #tpu.memory_space<vmem>>, %arg4: memref<16x8xf32, #tpu.memory_space<vmem>>) attributes {dimension_semantics = [#tpu.dimension_semantics<parallel>], iteration_bounds = array<i64: 1>, scalar_prefetch = 0 : i64, scratch_operands = 0 : i64, tpu.core_type = #tpu.core_type<tc>, window_params = [{transform_indices = @transform_0, window_bounds = array<i64: 16, 128>}, {pipeline_mode = #tpu.pipeline_mode<synchronous>, transform_indices = @transform_1, window_bounds = array<i64: 4, 128, 128>}, {pipeline_mode = #tpu.pipeline_mode<synchronous>, transform_indices = @transform_2, window_bounds = array<i64: 4, 1, 128>}, {transform_indices = @transform_3, window_bounds = array<i64: 16, 8>}]} {
    %c0 = arith.constant 0 : index
    %c0_0 = arith.constant 0 : index
    %0 = vector.load %arg1[%c0, %c0_0] : memref<16x128xf32, #tpu.memory_space<vmem>>, vector<16x128xf32>
    %1 = arith.truncf %0 : vector<16x128xf32> to vector<16x128xbf16>
    %c0_1 = arith.constant 0 : index
    %c0_2 = arith.constant 0 : index
    %c0_3 = arith.constant 0 : index
    %2 = vector.load %arg2[%c0_1, %c0_2, %c0_3] : memref<4x128x128xbf16, #tpu.memory_space<vmem>>, vector<1x128x128xbf16>
    %3 = vector.shape_cast %2 : vector<1x128x128xbf16> to vector<128x128xbf16>
    %cst = arith.constant dense<0.000000e+00> : vector<16x128xf32>
    %4 = tpu.matmul %1, %3, %cst {dimension_numbers = #tpu.dot_dimension_numbers<[1], [0], [0], [1], [0, 0, 1, 1], [], []>} : vector<16x128xbf16>, vector<128x128xbf16>, vector<16x128xf32> -> vector<16x128xf32>
    %c0_4 = arith.constant 0 : index
    %c0_5 = arith.constant 0 : index
    %c0_6 = arith.constant 0 : index
    %5 = vector.load %arg3[%c0_4, %c0_5, %c0_6] : memref<4x1x128xf32, #tpu.memory_space<vmem>>, vector<1x1x128xf32>
    %6 = vector.shape_cast %5 : vector<1x1x128xf32> to vector<1x128xf32>
    %7 = vector.broadcast %6 : vector<1x128xf32> to vector<16x128xf32>
    %8 = arith.addf %4, %7 : vector<16x128xf32>
    %cst_7 = arith.constant 0.000000e+00 : f32
    %9 = vector.broadcast %cst_7 : f32 to vector<16x128xf32>
    %10 = arith.cmpf ogt, %8, %9 : vector<16x128xf32>
    %cst_8 = arith.constant 0.00999999977 : f32
    %11 = vector.broadcast %cst_8 : f32 to vector<16x128xf32>
    %12 = arith.mulf %11, %8 : vector<16x128xf32>
    %13 = arith.select %10, %8, %12 : vector<16x128xi1>, vector<16x128xf32>
    %14 = arith.truncf %13 : vector<16x128xf32> to vector<16x128xbf16>
    %c1 = arith.constant 1 : index
    %c0_9 = arith.constant 0 : index
    %c0_10 = arith.constant 0 : index
    %15 = vector.load %arg2[%c1, %c0_9, %c0_10] : memref<4x128x128xbf16, #tpu.memory_space<vmem>>, vector<1x128x128xbf16>
    %16 = vector.shape_cast %15 : vector<1x128x128xbf16> to vector<128x128xbf16>
    %cst_11 = arith.constant dense<0.000000e+00> : vector<16x128xf32>
    %17 = tpu.matmul %14, %16, %cst_11 {dimension_numbers = #tpu.dot_dimension_numbers<[1], [0], [0], [1], [0, 0, 1, 1], [], []>} : vector<16x128xbf16>, vector<128x128xbf16>, vector<16x128xf32> -> vector<16x128xf32>
    %c1_12 = arith.constant 1 : index
    %c0_13 = arith.constant 0 : index
    %c0_14 = arith.constant 0 : index
    %18 = vector.load %arg3[%c1_12, %c0_13, %c0_14] : memref<4x1x128xf32, #tpu.memory_space<vmem>>, vector<1x1x128xf32>
    %19 = vector.shape_cast %18 : vector<1x1x128xf32> to vector<1x128xf32>
    %20 = vector.broadcast %19 : vector<1x128xf32> to vector<16x128xf32>
    %21 = arith.addf %17, %20 : vector<16x128xf32>
    %cst_15 = arith.constant 0.000000e+00 : f32
    %22 = vector.broadcast %cst_15 : f32 to vector<16x128xf32>
    %23 = arith.cmpf ogt, %21, %22 : vector<16x128xf32>
    %cst_16 = arith.constant 0.00999999977 : f32
    %24 = vector.broadcast %cst_16 : f32 to vector<16x128xf32>
    %25 = arith.mulf %24, %21 : vector<16x128xf32>
    %26 = arith.select %23, %21, %25 : vector<16x128xi1>, vector<16x128xf32>
    %27 = arith.truncf %26 : vector<16x128xf32> to vector<16x128xbf16>
    %c2 = arith.constant 2 : index
    %c0_17 = arith.constant 0 : index
    %c0_18 = arith.constant 0 : index
    %28 = vector.load %arg2[%c2, %c0_17, %c0_18] : memref<4x128x128xbf16, #tpu.memory_space<vmem>>, vector<1x128x128xbf16>
    %29 = vector.shape_cast %28 : vector<1x128x128xbf16> to vector<128x128xbf16>
    %cst_19 = arith.constant dense<0.000000e+00> : vector<16x128xf32>
    %30 = tpu.matmul %27, %29, %cst_19 {dimension_numbers = #tpu.dot_dimension_numbers<[1], [0], [0], [1], [0, 0, 1, 1], [], []>} : vector<16x128xbf16>, vector<128x128xbf16>, vector<16x128xf32> -> vector<16x128xf32>
    %c2_20 = arith.constant 2 : index
    %c0_21 = arith.constant 0 : index
    %c0_22 = arith.constant 0 : index
    %31 = vector.load %arg3[%c2_20, %c0_21, %c0_22] : memref<4x1x128xf32, #tpu.memory_space<vmem>>, vector<1x1x128xf32>
    %32 = vector.shape_cast %31 : vector<1x1x128xf32> to vector<1x128xf32>
    %33 = vector.broadcast %32 : vector<1x128xf32> to vector<16x128xf32>
    %34 = arith.addf %30, %33 : vector<16x128xf32>
    %cst_23 = arith.constant 0.000000e+00 : f32
    %35 = vector.broadcast %cst_23 : f32 to vector<16x128xf32>
    %36 = arith.cmpf ogt, %34, %35 : vector<16x128xf32>
    %cst_24 = arith.constant 0.00999999977 : f32
    %37 = vector.broadcast %cst_24 : f32 to vector<16x128xf32>
    %38 = arith.mulf %37, %34 : vector<16x128xf32>
    %39 = arith.select %36, %34, %38 : vector<16x128xi1>, vector<16x128xf32>
    %40 = arith.truncf %39 : vector<16x128xf32> to vector<16x128xbf16>
    %c3 = arith.constant 3 : index
    %c0_25 = arith.constant 0 : index
    %c0_26 = arith.constant 0 : index
    %41 = vector.load %arg2[%c3, %c0_25, %c0_26] : memref<4x128x128xbf16, #tpu.memory_space<vmem>>, vector<1x128x128xbf16>
    %42 = vector.shape_cast %41 : vector<1x128x128xbf16> to vector<128x128xbf16>
    %cst_27 = arith.constant dense<0.000000e+00> : vector<16x128xf32>
    %43 = tpu.matmul %40, %42, %cst_27 {dimension_numbers = #tpu.dot_dimension_numbers<[1], [0], [0], [1], [0, 0, 1, 1], [], []>} : vector<16x128xbf16>, vector<128x128xbf16>, vector<16x128xf32> -> vector<16x128xf32>
    %c3_28 = arith.constant 3 : index
    %c0_29 = arith.constant 0 : index
    %c0_30 = arith.constant 0 : index
    %44 = vector.load %arg3[%c3_28, %c0_29, %c0_30] : memref<4x1x128xf32, #tpu.memory_space<vmem>>, vector<1x1x128xf32>
    %45 = vector.shape_cast %44 : vector<1x1x128xf32> to vector<1x128xf32>
    %46 = vector.broadcast %45 : vector<1x128xf32> to vector<16x128xf32>
    %47 = arith.addf %43, %46 : vector<16x128xf32>
    %48 = vector.extract_strided_slice %47 {offsets = [0, 0], sizes = [16, 8], strides = [1, 1]} : vector<16x128xf32> to vector<16x8xf32>
    %c0_31 = arith.constant 0 : index
    %c0_32 = arith.constant 0 : index
    %49 = vector.load %arg4[%c0_31, %c0_32] : memref<16x8xf32, #tpu.memory_space<vmem>>, vector<16x8xf32>
    tpu.vector_store %arg4[%c0_31, %c0_32], %48 {strides = array<i32>} : memref<16x8xf32, #tpu.memory_space<vmem>>, vector<16x8xf32>,
    return
  }
  func.func @transform_0(%arg0: i32) -> (i32, i32) {
    %c0_i32 = arith.constant 0 : i32
    %c0_i32_0 = arith.constant 0 : i32
    return %arg0, %c0_i32 : i32, i32
  }
  func.func @transform_1(%arg0: i32) -> (i32, i32, i32) {
    %c0_i32 = arith.constant 0 : i32
    %c0_i32_0 = arith.constant 0 : i32
    %c0_i32_1 = arith.constant 0 : i32
    %c0_i32_2 = arith.constant 0 : i32
    return %c0_i32, %c0_i32_0, %c0_i32_1 : i32, i32, i32
  }
  func.func @transform_2(%arg0: i32) -> (i32, i32, i32) {
    %c0_i32 = arith.constant 0 : i32
    %c0_i32_0 = arith.constant 0 : i32
    %c0_i32_1 = arith.constant 0 : i32
    %c0_i32_2 = arith.constant 0 : i32
    return %c0_i32, %c0_i32_0, %c0_i32_1 : i32, i32, i32
  }
  func.func @transform_3(%arg0: i32) -> (i32, i32) {
    %c0_i32 = arith.constant 0 : i32
    %c0_i32_0 = arith.constant 0 : i32
    return %arg0, %c0_i32 : i32, i32
  }
}

</mosaic_0001>

<bundles_post_ra>
// kernel: tpu_custom_call.1
= control target key start
LH: loop header
LB: loop body
LE: loop exit
PB: predicated region body
PF: predicated region fallthrough
CT: control target
= control target key end

     0   :  { %8 = vsyncpa [#allocation3], 0  ;;  %s883_s0 = inlined_call_operand.hbm [shape: f32[16,128], index: 0, kind: input, shape index: {}]   ;;  %s884_s1 = inlined_call_operand.hbm [shape: bf16[4,128,128], index: 1, kind: input, shape index: {}]   ;;  %s885_s2 = inlined_call_operand.vmem [shape: f32[4,1,128], index: 2, kind: input, shape index: {}]   ;;  %s886_s3 = inlined_call_operand.vmem [shape: f32[16,8], index: 3, kind: output, shape index: {}]  }
   0x1   :  { %9 = vsyncpa [#allocation5], 0  ;;  %s773_s12 = smov [#allocation2]   ;;  %s725_s16 = scalar_lea.hbm %s883_s0, 256 }
   0x2   :  { %s15_s13 = sshll.u32 %s773_s12, 4  ;;  %p726_p0 = scmp.ne.s32.totalorder %s883_s0, %s725_s16  ;;  %s16_s13 = int_to_ptr.vmem [resolvable:$true] %s15_s13 }
   0x3   :  { %p729_p1 = scmp.lt.u32.totalorder %s725_s16, %s883_s0 }
   0x5   :  { %p731_p2 = pnand %p729_p1, %p726_p0 }
   0x7   :  { %734 = shalt.err (!%p731_p2)
}
   0x8   :  { %s735_s21 = scalar_lea.vmem %s16_s13, 256  ;;  %p740_p4 = scmp.lt.s32.totalorder %s16_s13, %s16_s13 }
   0x9   :  { %p736_p3 = scmp.ne.s32.totalorder %s16_s13, %s735_s21  ;;  %p741_p5 = scmp.lt.s32.totalorder %s735_s21, %s735_s21 }
   0xb   :  { %p742_p6 = por %p741_p5, %p740_p4 }
   0xd   :  { %p743_p7 = pnand %p742_p6, %p736_p3 }
   0xf   :  { %746 = shalt.err (!%p743_p7)
}
  0x10   :  { %s774_s22 = smov 128   ;;  %s775_s23 = smov 8  }
  0x11   :  { %21 = dma.hbm_to_vmem [thread:$0]  %s883_s0, 256, %s16_s13, [#allocation3], %s774_s22, %s774_s22, %s775_s23  }
  0x12   :  { %s776_s26 = smov [#allocation4]   ;;  %s747_s30 = scalar_lea.hbm %s884_s1, 4096 }
  0x13   :  { %s27_s27 = sshll.u32 %s776_s26, 4  ;;  %p748_p8 = scmp.ne.s32.totalorder %s884_s1, %s747_s30  ;;  %s28_s27 = int_to_ptr.vmem [resolvable:$true] %s27_s27 }
  0x14   :  { %p751_p9 = scmp.lt.u32.totalorder %s747_s30, %s884_s1 }
  0x16   :  { %p753_p10 = pnand %p751_p9, %p748_p8 }
  0x18   :  { %756 = shalt.err (!%p753_p10)
}
  0x19   :  { %s757_s8 = scalar_lea.vmem %s28_s27, 4096  ;;  %p762_p12 = scmp.lt.s32.totalorder %s28_s27, %s28_s27 }
  0x1a   :  { %p758_p11 = scmp.ne.s32.totalorder %s28_s27, %s757_s8  ;;  %p763_p13 = scmp.lt.s32.totalorder %s757_s8, %s757_s8 }
  0x1c   :  { %p764_p0 = por %p763_p13, %p762_p12 }
  0x1e   :  { %p765_p1 = pnand %p764_p0, %p758_p11 }
  0x20   :  { %768 = shalt.err (!%p765_p1)
}
  0x21   :  { %s777_s0 = smov 64   ;;  %s778_s9 = smov 4  }
  0x22   :  { %33 = dma.hbm_to_vmem [thread:$0]  %s884_s1, 4096, %s28_s27, [#allocation5], %s777_s0, %s777_s0, %s778_s9  }
  0x23   :  { %769 = dma.done.wait [#allocation3], 256  }
  0x24   :  { %770 = vsyncadd [#allocation3], 4294967040 }
  0x25   :  { %771 = dma.done.wait [#allocation5], 4096  }
  0x26   :  { %772 = vsyncadd [#allocation5], 4294963200  ;;  %v779_v0 = vmov 0.0   ;;  %vm780_vm0 = vmmov 0   ;;  %v693_v1 = vld [vmem:[#allocation4] sm:$0xff]   ;;  %v694_v2 = vld [vmem:[#allocation4 + $0x8] sm:$0xff]  }
  0x27   :  { %605 = vmatprep.subr.bf16.mxu0 %v779_v0  ;;  %621 = vmatprep.mubr.msk.bf16.mxu0 %vm780_vm0, %v779_v0  ;;  %v695_v3 = vld [vmem:[#allocation4 + $0x10] sm:$0xff]   ;;  %v701_v4 = vld [vmem:[#allocation4 + $0x40] sm:$0xff]   ;;  %v696_v5 = vld [vmem:[#allocation4 + $0x18] sm:$0xff]   ;;  %vm521_vm7 = vcmask 64512  }
  0x28   :  { %625 = vmatprep.subr.bf16.mxu1 %v779_v0  ;;  %641 = vmatprep.mubr.msk.bf16.mxu1 %vm780_vm0, %v779_v0  ;;  %v702_v6 = vld [vmem:[#allocation4 + $0x48] sm:$0xff]   ;;  %v697_v7 = vld [vmem:[#allocation4 + $0x20] sm:$0xff]   ;;  %v703_v8 = vld [vmem:[#allocation4 + $0x50] sm:$0xff]  }
  0x29   :  { %606 = vmatpush3.bf16.msra.mxu0 %v693_v1  ;;  %626 = vmatpush3.bf16.msra.mxu1 %v701_v4  ;;  %v698_v9 = vld [vmem:[#allocation4 + $0x28] sm:$0xff]   ;;  %v704_v10 = vld [vmem:[#allocation4 + $0x58] sm:$0xff]   ;;  %v699_v11 = vld [vmem:[#allocation4 + $0x30] sm:$0xff]  }
  0x2a   :  { %607 = vmatprep.subr.bf16.mxu0 %v779_v0  ;;  %627 = vmatprep.subr.bf16.mxu1 %v779_v0  ;;  %v705_v12 = vld [vmem:[#allocation4 + $0x60] sm:$0xff]   ;;  %v700_v13 = vld [vmem:[#allocation4 + $0x38] sm:$0xff]   ;;  %v43_v14 = vld [vmem:[#allocation2] sm:$0xff] }
  0x2b   :  { %v44_v15 = vld [vmem:[#allocation2 + $0x8] sm:$0xff]  ;;  %v706_v16 = vld [vmem:[#allocation4 + $0x68] sm:$0xff]   ;;  %v707_v18 = vld [vmem:[#allocation4 + $0x70] sm:$0xff]  }
  0x2c   :  { %v45_v17 = vpack.c.bf16 %v44_v15, %v43_v14  ;;  %v708_v19 = vld [vmem:[#allocation4 + $0x78] sm:$0xff]   ;;  %v709_v20 = vld [vmem:[#allocation4 + $0x80] sm:$0xff]   ;;  %v710_v21 = vld [vmem:[#allocation4 + $0x88] sm:$0xff]  }
  0x2d   :  { %608 = vmatpush3.bf16.msra.mxu0 %v694_v2  ;;  %628 = vmatpush3.bf16.msra.mxu1 %v702_v6  ;;  %v711_v22 = vld [vmem:[#allocation4 + $0x90] sm:$0xff]   ;;  %v712_v23 = vld [vmem:[#allocation4 + $0x98] sm:$0xff]   ;;  %v713_v24 = vld [vmem:[#allocation4 + $0xa0] sm:$0xff]  }
  0x2e   :  { %609 = vmatprep.subr.bf16.mxu0 %v779_v0  ;;  %629 = vmatprep.subr.bf16.mxu1 %v779_v0  ;;  %v714_v25 = vld [vmem:[#allocation4 + $0xa8] sm:$0xff]   ;;  %v530_v26 = vld [vmem:[%s885_s2] ss:$0 sm:$0xff]  ;;  %v715_v38 = vld [vmem:[#allocation4 + $0xb0] sm:$0xff]  }
  0x2f   :  { %v716_v39 = vld [vmem:[#allocation4 + $0xb8] sm:$0xff]   ;;  %v717_v40 = vld [vmem:[#allocation4 + $0xc0] sm:$0xff]   ;;  %v718_v41 = vld [vmem:[#allocation4 + $0xc8] sm:$0xff]  }
  0x30   :  { %v719_v42 = vld [vmem:[#allocation4 + $0xd0] sm:$0xff]   ;;  %v720_v43 = vld [vmem:[#allocation4 + $0xd8] sm:$0xff]   ;;  %v721_v44 = vld [vmem:[#allocation4 + $0xe0] sm:$0xff]  }
  0x31   :  { %610 = vmatpush3.bf16.msra.mxu0 %v695_v3  ;;  %630 = vmatpush3.bf16.msra.mxu1 %v703_v8  ;;  %v722_v45 = vld [vmem:[#allocation4 + $0xe8] sm:$0xff]   ;;  %v540_v46 = vld [vmem:[%s885_s2 + $0x1] ss:$0 sm:$0xff]  ;;  %v723_v58 = vld [vmem:[#allocation4 + $0xf0] sm:$0xff]  }
  0x32   :  { %611 = vmatprep.subr.bf16.mxu0 %v779_v0  ;;  %631 = vmatprep.subr.bf16.mxu1 %v779_v0  ;;  %v724_v59 = vld [vmem:[#allocation4 + $0xf8] sm:$0xff]   ;;  %v550_v60 = vld [vmem:[%s885_s2 + $0x2] ss:$0 sm:$0xff] }
  0x35   :  { %612 = vmatpush3.bf16.msra.mxu0 %v696_v5  ;;  %632 = vmatpush3.bf16.msra.mxu1 %v704_v10 }
  0x36   :  { %613 = vmatprep.subr.bf16.mxu0 %v779_v0  ;;  %633 = vmatprep.subr.bf16.mxu1 %v779_v0 }
  0x39   :  { %614 = vmatpush3.bf16.msra.mxu0 %v697_v7  ;;  %634 = vmatpush3.bf16.msra.mxu1 %v705_v12 }
  0x3a   :  { %615 = vmatprep.subr.bf16.mxu0 %v779_v0  ;;  %635 = vmatprep.subr.bf16.mxu1 %v779_v0 }
  0x3d   :  { %616 = vmatpush3.bf16.msra.mxu0 %v698_v9  ;;  %636 = vmatpush3.bf16.msra.mxu1 %v706_v16 }
  0x3e   :  { %617 = vmatprep.subr.bf16.mxu0 %v779_v0  ;;  %637 = vmatprep.subr.bf16.mxu1 %v779_v0 }
  0x41   :  { %618 = vmatpush3.bf16.msra.mxu0 %v699_v11  ;;  %638 = vmatpush3.bf16.msra.mxu1 %v707_v18 }
  0x42   :  { %619 = vmatprep.subr.bf16.mxu0 %v779_v0  ;;  %639 = vmatprep.subr.bf16.mxu1 %v779_v0 }
  0x45   :  { %620 = vmatpush3.bf16.msra.mxu0 %v700_v13  ;;  %640 = vmatpush3.bf16.msra.mxu1 %v708_v19 }
  0x46   :  { %645 = vmatprep.subr.bf16.mxu0 %v779_v0  ;;  %665 = vmatprep.subr.bf16.mxu1 %v779_v0 }
  0x48   :  { %622 = vmatmul.mubr.bf16.vlgmr.msra.gmra.mrb[0].mxu0 %v45_v17 }
  0x49   :  { %661 = vmatprep.mubr.msk.bf16.mxu0 %vm780_vm0, %v779_v0  ;;  %646 = vmatpush3.bf16.msra.mxu0 %v709_v20 }
  0x4a   :  { %647 = vmatprep.subr.bf16.mxu0 %v779_v0 }
  0x4d   :  { %648 = vmatpush3.bf16.msra.mxu0 %v710_v21 }
  0x4e   :  { %649 = vmatprep.subr.bf16.mxu0 %v779_v0 }
  0x51   :  { %650 = vmatpush3.bf16.msra.mxu0 %v711_v22 }
  0x52   :  { %651 = vmatprep.subr.bf16.mxu0 %v779_v0 }
  0x55   :  { %652 = vmatpush3.bf16.msra.mxu0 %v712_v23 }
  0x56   :  { %653 = vmatprep.subr.bf16.mxu0 %v779_v0 }
  0x59   :  { %654 = vmatpush3.bf16.msra.mxu0 %v713_v24 }
  0x5a   :  { %655 = vmatprep.subr.bf16.mxu0 %v779_v0 }
  0x5d   :  { %656 = vmatpush3.bf16.msra.mxu0 %v714_v25 }
  0x5e   :  { %657 = vmatprep.subr.bf16.mxu0 %v779_v0 }
  0x61   :  { %658 = vmatpush3.bf16.msra.mxu0 %v715_v38 }
  0x62   :  { %659 = vmatprep.subr.bf16.mxu0 %v779_v0 }
  0x65   :  { %660 = vmatpush3.bf16.msra.mxu0 %v716_v39 }
 0x11b   :  { %v151_v27 = vpop.f32.mrb[0].mxu0 }
 0x11c   :  { %v152_v28 = vadd.f32 %v530_v26, %v151_v27  ;;  %v623_v29 = vpop.f32.mrb[1].mxu0 }
 0x11d   :  { %v154_v30 = vpop.f32.mrb[2].mxu0 }
 0x11e   :  { %v160_v31 = vmul.f32 0.01, %v152_v28  ;;  %v155_v32 = vadd.f32 %v530_v26, %v154_v30  ;;  %v624_v33 = vpop.f32.mrb[3].mxu0  ;;  %vm158_vm1 = vcmp.gt.f32.partialorder %v152_v28, 0.0 }
 0x120   :  { %vm159_vm2 = vcmp.gt.f32.partialorder %v155_v32, 0.0  ;;  %v161_v34 = vmul.f32 0.01, %v155_v32  ;;  %v162_v35 = vsel %vm158_vm1, %v152_v28, %v160_v31 }
 0x122   :  { %v163_v36 = vsel %vm159_vm2, %v155_v32, %v161_v34 }
 0x123   :  { %v164_v37 = vpack.c.bf16 %v163_v36, %v162_v35 }
 0x125   :  { %642 = vmatmul.mubr.bf16.vlgmr.msra.gmra.mrb[0].mxu1 %v164_v37 }
 0x126   :  { %681 = vmatprep.mubr.msk.bf16.mxu1 %vm780_vm0, %v779_v0  ;;  %666 = vmatpush3.bf16.msra.mxu1 %v717_v40 }
 0x127   :  { %667 = vmatprep.subr.bf16.mxu1 %v779_v0 }
 0x12a   :  { %668 = vmatpush3.bf16.msra.mxu1 %v718_v41 }
 0x12b   :  { %669 = vmatprep.subr.bf16.mxu1 %v779_v0 }
 0x12e   :  { %670 = vmatpush3.bf16.msra.mxu1 %v719_v42 }
 0x12f   :  { %671 = vmatprep.subr.bf16.mxu1 %v779_v0 }
 0x132   :  { %672 = vmatpush3.bf16.msra.mxu1 %v720_v43 }
 0x133   :  { %673 = vmatprep.subr.bf16.mxu1 %v779_v0 }
 0x136   :  { %674 = vmatpush3.bf16.msra.mxu1 %v721_v44 }
 0x137   :  { %675 = vmatprep.subr.bf16.mxu1 %v779_v0 }
 0x13a   :  { %676 = vmatpush3.bf16.msra.mxu1 %v722_v45 }
 0x13b   :  { %677 = vmatprep.subr.bf16.mxu1 %v779_v0 }
 0x13e   :  { %678 = vmatpush3.bf16.msra.mxu1 %v723_v58 }
 0x13f   :  { %679 = vmatprep.subr.bf16.mxu1 %v779_v0  ;;  %v560_v0 = vld [vmem:[%s885_s2 + $0x3] ss:$0 sm:$0xff] }
 0x142   :  { %680 = vmatpush3.bf16.msra.mxu1 %v724_v59 }
 0x1f8   :  { %v272_v47 = vpop.f32.mrb[0].mxu1 }
 0x1f9   :  { %v273_v48 = vadd.f32 %v540_v46, %v272_v47  ;;  %v643_v49 = vpop.f32.mrb[1].mxu1 }
 0x1fa   :  { %v275_v50 = vpop.f32.mrb[2].mxu1 }
 0x1fb   :  { %v281_v51 = vmul.f32 0.01, %v273_v48  ;;  %v276_v52 = vadd.f32 %v540_v46, %v275_v50  ;;  %v644_v53 = vpop.f32.mrb[3].mxu1  ;;  %vm279_vm3 = vcmp.gt.f32.partialorder %v273_v48, 0.0 }
 0x1fd   :  { %vm280_vm4 = vcmp.gt.f32.partialorder %v276_v52, 0.0  ;;  %v282_v54 = vmul.f32 0.01, %v276_v52  ;;  %v283_v55 = vsel %vm279_vm3, %v273_v48, %v281_v51 }
 0x1ff   :  { %v284_v56 = vsel %vm280_vm4, %v276_v52, %v282_v54 }
 0x200   :  { %v285_v57 = vpack.c.bf16 %v284_v56, %v283_v55 }
 0x202   :  { %662 = vmatmul.mubr.bf16.vlgmr.msra.gmra.mrb[4].mxu0 %v285_v57 }
 0x2d5   :  { %v393_v61 = vpop.f32.mrb[4].mxu0 }
 0x2d6   :  { %v394_v62 = vadd.f32 %v550_v60, %v393_v61  ;;  %v663_v63 = vpop.f32.mrb[5].mxu0 }
 0x2d7   :  { %v396_v1 = vpop.f32.mrb[6].mxu0 }
 0x2d8   :  { %v402_v2 = vmul.f32 0.01, %v394_v62  ;;  %v397_v3 = vadd.f32 %v550_v60, %v396_v1  ;;  %v664_v4 = vpop.f32.mrb[7].mxu0  ;;  %vm400_vm5 = vcmp.gt.f32.partialorder %v394_v62, 0.0 }
 0x2da   :  { %vm401_vm6 = vcmp.gt.f32.partialorder %v397_v3, 0.0  ;;  %v403_v5 = vmul.f32 0.01, %v397_v3  ;;  %v404_v6 = vsel %vm400_vm5, %v394_v62, %v402_v2 }
 0x2dc   :  { %v405_v7 = vsel %vm401_vm6, %v397_v3, %v403_v5 }
 0x2dd   :  { %v406_v8 = vpack.c.bf16 %v405_v7, %v404_v6 }
 0x2df   :  { %682 = vmatmul.mubr.bf16.vlgmr.msra.gmra.mrb[4].mxu1 %v406_v8 }
 0x3b2   :  { %v514_v9 = vpop.f32.mrb[4].mxu1 }
 0x3b3   :  { %v515_v10 = vadd.f32 %v560_v0, %v514_v9  ;;  %v683_v11 = vpop.f32.mrb[5].mxu1 }
 0x3b4   :  { %v517_v12 = vpop.f32.mrb[6].mxu1 }
 0x3b5   :  { %522 = vst.msk [vmem:[%s886_s3] sm:$0xff] %vm521_vm7, %v515_v10  ;;  %v518_v13 = vadd.f32 %v560_v0, %v517_v12  ;;  %v684_v14 = vpop.f32.mrb[7].mxu1 }
 0x3b7   :  { %523 = vst.msk [vmem:[%s886_s3 + $0x8] sm:$0xff] %vm521_vm7, %v518_v13 }
 0x3b8   :  { %528 = vsyncpa [#allocation3], 1 }
 0x3b9   :  { %529 = vsyncpa [#allocation5], 1 }

</bundles_post_ra>
